<compile_context>
chip_gen: v6e
topology: v6e:2x2x1
jax: 0.10.0
libtpu: 0.0.40
codegen_flags: <defaults>
</compile_context>

<pallas_src>
import functools

import jax
import jax.numpy as jnp
from jax.experimental import pallas as pl
from jax.experimental.pallas import tpu as pltpu


# ----------------------------------------------------------------------------
# Tile-size / VMEM budgeting
# ----------------------------------------------------------------------------
_TILED_VMEM_BUDGET = 24 * 1024 * 1024   # double-buffered working set target
_TILED_VMEM_LIMIT = 32 * 1024 * 1024    # scoped limit (safe on v7x's 64 MiB)
_SINGLE_VMEM_BUDGET = 12 * 1024 * 1024  # no-grid block (fits v5e's 16 MiB dflt)


def _round_up(x, m):
    return (x + m - 1) // m * m


def _derive_block_b(d):
    """Rows per tile so 2 double-buffered inputs + label fit the VMEM budget."""
    padded_d = _round_up(max(d, 1), 128)            # lane padding in VMEM
    # per row: 2 f32 input tiles (padded_d lanes) + 1 f32 label tile (padded
    # to 128 lanes), each double-buffered by the BlockSpec pipeline.
    bytes_per_row = 2 * (2 * padded_d + 128) * 4
    block_b = _TILED_VMEM_BUDGET // bytes_per_row
    block_b = max(8, (block_b // 8) * 8)
    return min(block_b, 8192)                       # diminishing returns cap


def _single_block_bytes(b, d):
    padded_d = _round_up(max(d, 1), 128)
    padded_b = _round_up(max(b, 1), 8)
    return padded_b * (2 * padded_d + 128) * 4


# ----------------------------------------------------------------------------
# Kernels
# ----------------------------------------------------------------------------
def _contrastive_loss_single_kernel(x1_ref, x2_ref, label_ref, out_ref, *,
                                    margin):
    """Whole problem in one VMEM block; scalar mean loss written to SMEM."""
    # F.pairwise_distance(x1, x2, p=2, eps=1e-6): ||x1 - x2 + eps||_2 per row
    eps = jnp.float32(1e-6)
    diff = x1_ref[...] - x2_ref[...] + eps                    # (B, D)
    sq_dist = jnp.sum(diff * diff, axis=-1, keepdims=True)    # (B, 1) == d^2
    dist = jnp.sqrt(sq_dist)                                  # (B, 1)

    lbl = label_ref[...]                                      # (B, 1)
    hinge = jnp.maximum(jnp.float32(margin) - dist, 0.0)
    # (1-l)*d^2 + l*hinge^2  ==  d^2 + l*(hinge^2 - d^2)
    per_pair = sq_dist + lbl * (hinge * hinge - sq_dist)      # (B, 1)

    # torch.mean over the (B, 1) tensor -> divide by B
    out_ref[0, 0] = jnp.sum(per_pair) / jnp.float32(per_pair.shape[0])


def _contrastive_loss_tiled_kernel(x1_ref, x2_ref, label_ref, out_ref, *,
                                   margin, total_b, block_b):
    """One batch tile per grid step; emits a lane-dense partial-sum block."""
    i = pl.program_id(0)

    eps = jnp.float32(1e-6)
    diff = x1_ref[...] - x2_ref[...] + eps                    # (TB, D)
    sq_dist = jnp.sum(diff * diff, axis=-1, keepdims=True)    # (TB, 1)
    dist = jnp.sqrt(sq_dist)

    lbl = label_ref[...]                                      # (TB, 1)
    hinge = jnp.maximum(jnp.float32(margin) - dist, 0.0)
    per_pair = sq_dist + lbl * (hinge * hinge - sq_dist)      # (TB, 1)

    # Mask rows beyond the true batch size.  The last tile may be ragged (no
    # wrapper-side padding), so its tail rows contain unspecified data; the
    # jnp.where SELECT discards any NaN/Inf produced from that garbage and
    # keeps the outside divide-by-true-B mean exact.
    row = jax.lax.broadcasted_iota(jnp.int32, per_pair.shape, 0) + i * block_b
    per_pair = jnp.where(row < total_b, per_pair, jnp.float32(0.0))

    tile_sum = jnp.sum(per_pair)

    # (1, 8, 128) lane-dense, (8,128)-aligned block: tile_sum at [0,0,0] and
    # zeros elsewhere, so the wrapper can do a DENSE jnp.sum(partials) that is
    # bit-exact (no strided gather, no rescale).
    sub = jax.lax.broadcasted_iota(jnp.int32, (1, 8, 128), 1)
    lane = jax.lax.broadcasted_iota(jnp.int32, (1, 8, 128), 2)
    out_ref[...] = jnp.where((sub == 0) & (lane == 0), tile_sum,
                             jnp.float32(0.0))


# ----------------------------------------------------------------------------
# Wrapper
# ----------------------------------------------------------------------------
def contrastive_loss(output1, output2, label, margin=2.0, block_b=None):
    """Pallas implementation of ContrastiveLoss.forward.

    output1, output2: (B, D) float32
    label:            (B,) or (B, 1) float32 (0 = similar, 1 = dissimilar)
    returns: scalar float32 loss
    """
    B, D = output1.shape
    assert output2.shape == (B, D)
    output1 = output1.astype(jnp.float32)
    output2 = output2.astype(jnp.float32)
    label = label.astype(jnp.float32).reshape(B, 1)

    if block_b is None:
        block_b = _derive_block_b(D)
    assert block_b % 8 == 0, "batch tile must be a sublane multiple"

    # ---------------- small batch: single block, no grid, SMEM scalar out ---
    # Guarded on VMEM size too (large D must not blow the single block).
    if B <= block_b and _single_block_bytes(B, D) <= _SINGLE_VMEM_BUDGET:
        kernel = functools.partial(_contrastive_loss_single_kernel,
                                   margin=margin)
        out = pl.pallas_call(
            kernel,
            out_shape=jax.ShapeDtypeStruct((1, 1), jnp.float32),
            in_specs=[
                pl.BlockSpec(memory_space=pltpu.VMEM),
                pl.BlockSpec(memory_space=pltpu.VMEM),
                pl.BlockSpec(memory_space=pltpu.VMEM),
            ],
            out_specs=pl.BlockSpec(memory_space=pltpu.SMEM),
        )(output1, output2, label)
        return out[0, 0]

    # ---------------- large batch: tile over rows, parallel partial sums ----
    # No wrapper-side padding: ragged last tile is handled by the in-kernel
    # row mask (a select), so we never re-materialize the (B, D) inputs.
    block_b = min(block_b, _round_up(B, 8))
    num_tiles = pl.cdiv(B, block_b)

    kernel = functools.partial(_contrastive_loss_tiled_kernel,
                               margin=margin, total_b=B, block_b=block_b)
    partials = pl.pallas_call(
        kernel,
        out_shape=jax.ShapeDtypeStruct((num_tiles, 8, 128), jnp.float32),
        grid=(num_tiles,),
        in_specs=[
            pl.BlockSpec((block_b, D), lambda i: (i, 0)),
            pl.BlockSpec((block_b, D), lambda i: (i, 0)),
            pl.BlockSpec((block_b, 1), lambda i: (i, 0)),
        ],
        out_specs=pl.BlockSpec((1, 8, 128), lambda i: (i, 0, 0)),
        compiler_params=pltpu.CompilerParams(
            # independent per-tile partials -> shard across TensorCores (v7x);
            # harmless on single-TC v5e/v6e.
            dimension_semantics=("parallel",),
            # block_b is derived so the double-buffered working set (inputs
            # lane-padded to max(D,128), label padded to 128 lanes) stays
            # <= ~24 MiB, well under this limit on every generation.
            vmem_limit_bytes=_TILED_VMEM_LIMIT,
        ),
    )(output1, output2, label)

    # Dense final reduction (only [t,0,0] is nonzero) + mean over true B.
    return jnp.sum(partials) / jnp.float32(B)


# ----------------------------------------------------------------------------
# Reference + self-test
# ----------------------------------------------------------------------------
def _reference_loss(output1, output2, label, margin=2.0):
    # Plain-JAX mirror of the PyTorch forward (incl. pairwise_distance eps).
    eps = 1e-6
    d = jnp.sqrt(jnp.sum((output1 - output2 + eps) ** 2, axis=-1,
                         keepdims=True))
    return jnp.mean((1.0 - label) * d ** 2
                    + label * jnp.maximum(margin - d, 0.0) ** 2)


if __name__ == "__main__":
    key = jax.random.PRNGKey(0)
    k1, k2, k3, k4, k5, k6 = jax.random.split(key, 6)

    # ---- small siamese-embedding pairs -> single-block (no-grid) path ------
    B, D = 8, 32
    o1 = jax.random.normal(k1, (B, D), dtype=jnp.float32)
    o2 = jax.random.normal(k2, (B, D), dtype=jnp.float32)
    lbl = jax.random.bernoulli(k3, p=0.5, shape=(B, 1)).astype(jnp.float32)

    loss_small = jax.block_until_ready(contrastive_loss(o1, o2, lbl, margin=2.0))
    ref_small = _reference_loss(o1, o2, lbl, margin=2.0)
    assert jnp.allclose(loss_small, ref_small, rtol=1e-5, atol=1e-5), (
        loss_small, ref_small)

    # ---- larger ragged batch -> tiled path (grid over rows, ragged last) ---
    B2, D2, TB = 200, 32, 64           # 200 = 3*64 + 8 -> ragged last tile
    o1b = jax.random.normal(k4, (B2, D2), dtype=jnp.float32)
    o2b = jax.random.normal(k5, (B2, D2), dtype=jnp.float32)
    lblb = jax.random.bernoulli(k6, p=0.5, shape=(B2, 1)).astype(jnp.float32)

    loss_big = jax.block_until_ready(
        contrastive_loss(o1b, o2b, lblb, margin=2.0, block_b=TB))
    ref_big = _reference_loss(o1b, o2b, lblb, margin=2.0)
    assert jnp.allclose(loss_big, ref_big, rtol=1e-5, atol=1e-5), (
        loss_big, ref_big)

    print("KERNEL_OK")
</pallas_src>

<mosaic_0001>
module attributes {stable_mosaic.version = 11 : i64} {
  func.func @_contrastive_loss_single_kernel(%arg0: memref<8x32xf32, #tpu.memory_space<vmem>>, %arg1: memref<8x32xf32, #tpu.memory_space<vmem>>, %arg2: memref<8x1xf32, #tpu.memory_space<vmem>>, %arg3: memref<1x1xf32, #tpu.memory_space<smem>>) attributes {dimension_semantics = [], scalar_prefetch = 0 : i64, scratch_operands = 0 : i64, tpu.core_type = #tpu.core_type<tc>} {
    %c0 = arith.constant 0 : index
    %c0_0 = arith.constant 0 : index
    %0 = vector.load %arg0[%c0, %c0_0] : memref<8x32xf32, #tpu.memory_space<vmem>>, vector<8x32xf32>
    %c0_1 = arith.constant 0 : index
    %c0_2 = arith.constant 0 : index
    %1 = vector.load %arg1[%c0_1, %c0_2] : memref<8x32xf32, #tpu.memory_space<vmem>>, vector<8x32xf32>
    %2 = arith.subf %0, %1 : vector<8x32xf32>
    %cst = arith.constant 9.99999997E-7 : f32
    %3 = vector.broadcast %cst : f32 to vector<8x32xf32>
    %4 = arith.addf %2, %3 : vector<8x32xf32>
    %5 = arith.mulf %4, %4 : vector<8x32xf32>
    %cst_3 = arith.constant dense<0.000000e+00> : vector<8xf32>
    %6 = vector.multi_reduction <add>, %5, %cst_3 [1] : vector<8x32xf32> to vector<8xf32>
    %7 = vector.shape_cast %6 : vector<8xf32> to vector<8x1xf32>
    %8 = math.sqrt %7 : vector<8x1xf32>
    %c0_4 = arith.constant 0 : index
    %c0_5 = arith.constant 0 : index
    %9 = vector.load %arg2[%c0_4, %c0_5] : memref<8x1xf32, #tpu.memory_space<vmem>>, vector<8x1xf32>
    %cst_6 = arith.constant 2.000000e+00 : f32
    %10 = vector.broadcast %cst_6 : f32 to vector<8x1xf32>
    %11 = arith.subf %10, %8 : vector<8x1xf32>
    %cst_7 = arith.constant 0.000000e+00 : f32
    %12 = vector.broadcast %cst_7 : f32 to vector<8x1xf32>
    %13 = arith.maximumf %11, %12 : vector<8x1xf32>
    %14 = arith.mulf %13, %13 : vector<8x1xf32>
    %15 = arith.subf %14, %7 : vector<8x1xf32>
    %16 = arith.mulf %9, %15 : vector<8x1xf32>
    %17 = arith.addf %7, %16 : vector<8x1xf32>
    %18 = vector.shape_cast %17 : vector<8x1xf32> to vector<1x8x1xf32>
    %cst_8 = arith.constant dense<0.000000e+00> : vector<1xf32>
    %19 = vector.multi_reduction <add>, %18, %cst_8 [1, 2] : vector<1x8x1xf32> to vector<1xf32>
    %20 = vector.shape_cast %19 : vector<1xf32> to vector<1x1x1xf32>
    %21 = vector.extract %20[0, 0, 0] : f32 from vector<1x1x1xf32>
    %cst_9 = arith.constant 8.000000e+00 : f32
    %22 = arith.divf %21, %cst_9 : f32
    %c0_10 = arith.constant 0 : index
    %c0_11 = arith.constant 0 : index
    %23 = memref.load %arg3[%c0_10, %c0_11] : memref<1x1xf32, #tpu.memory_space<smem>>
    memref.store %22, %arg3[%c0_10, %c0_11] : memref<1x1xf32, #tpu.memory_space<smem>>
    return
  }
}

</mosaic_0001>

<bundles_post_ra>
// kernel: tpu_custom_call.1
= control target key start
LH: loop header
LB: loop body
LE: loop exit
PB: predicated region body
PF: predicated region fallthrough
CT: control target
= control target key end

     0   :  { %8 = vsyncpa [#allocation3], 0  ;;  %s152_s0 = inlined_call_operand.vmem [shape: f32[8,32], index: 0, kind: input, shape index: {}]   ;;  %s153_s1 = inlined_call_operand.hbm [shape: f32[8,32], index: 1, kind: input, shape index: {}]   ;;  %s154_s2 = inlined_call_operand.vmem [shape: f32[8,1], index: 2, kind: input, shape index: {}]   ;;  %s155_s3 = inlined_call_operand.hbm [shape: f32[1,1], index: 3, kind: output, shape index: {}]  }
   0x1   :  { %9 = vsyncpa [#allocation4], 0  ;;  %s118_s12 = smov [#allocation2]  }
   0x2   :  { %s18_s13 = sshll.u32 %s118_s12, 4  ;;  %s19_s13 = int_to_ptr.vmem [resolvable:$true] %s18_s13 }
   0x3   :  { %s94_s14 = scalar_lea.vmem %s19_s13, 128  ;;  %p99_p1 = scmp.lt.s32.totalorder %s19_s13, %s19_s13 }
   0x4   :  { %p95_p0 = scmp.ne.s32.totalorder %s19_s13, %s94_s14  ;;  %p100_p2 = scmp.lt.s32.totalorder %s94_s14, %s94_s14 }
   0x6   :  { %p101_p3 = por %p100_p2, %p99_p1 }
   0x8   :  { %p102_p4 = pnand %p101_p3, %p95_p0 }
   0xa   :  { %105 = shalt.err (!%p102_p4)
}
   0xb   :  { %21 = dma.hbm_to_vmem [thread:$0]  %s153_s1, 128, %s19_s13, [#allocation3]  }
   0xc   :  { %114 = dma.done.wait [#allocation3], 128  }
   0xd   :  { %115 = vsyncadd [#allocation3], 4294967168  ;;  %v27_v0 = vld [vmem:[%s152_s0] sm:$0xff]  ;;  %vm32_vm0 = vcmask 261120   ;;  %vm50_vm3 = vcmask 7168   ;;  %s119_s21 = smov [#allocation5]  }
   0xe   :  { %v28_v1 = vld [vmem:[#allocation2] sm:$0xff] }
   0xf   :  { %v29_v2 = vsub.f32 %v27_v0, %v28_v1  ;;  %v43_v15 = vld [vmem:[%s154_s2] sm:$0xff] }
  0x11   :  { %v30_v3 = vadd.f32 1e-06, %v29_v2 }
  0x13   :  { %v31_v4 = vmul.f32 %v30_v3, %v30_v3 }
  0x15   :  { %v33_v5 = vsel %vm32_vm0, %v31_v4, 0.0 }
  0x16   :  { %34 = vadd.xlane.f32.xlu0 %v33_v5 }
  0x9f   :  { %v35_v6 = vpop.xlane.xlu0 %34 }
  0xa0   :  { %84 = vrsqrt.f32 %v35_v6  ;;  %vm38_vm1 = vcmp.eq.f32.partialorder %v35_v6, inf  ;;  %v41_v9 = vand.u32 2147483648, %v35_v6  ;;  %vm40_vm2 = vcmp.eq.f32.partialorder %v35_v6, 0.0 }
  0xad   :  { %v85_v7 = vpop.eup %84 }
  0xae   :  { %v37_v8 = vmul.f32 %v85_v7, %v35_v6 }
  0xb0   :  { %v39_v10 = vsel %vm38_vm1, %v35_v6, %v37_v8 }
  0xb1   :  { %v42_v11 = vsel %vm40_vm2, %v41_v9, %v39_v10 }
  0xb2   :  { %v44_v12 = vsub.f32 2.0, %v42_v11 }
  0xb4   :  { %v45_v13 = vmax.f32 %v44_v12, 0.0 }
  0xb6   :  { %v46_v14 = vmul.f32 %v45_v13, %v45_v13 }
  0xb8   :  { %v47_v16 = vsub.f32 %v46_v14, %v35_v6 }
  0xba   :  { %v48_v17 = vmul.f32 %v47_v16, %v43_v15 }
  0xbc   :  { %v49_v18 = vadd.f32 %v48_v17, %v35_v6 }
  0xbe   :  { %v51_v19 = vsel %vm50_vm3, %v49_v18, 0.0 }
  0xbf   :  { %52 = vadd.xlane.f32.xlu0 %v51_v19 }
 0x148   :  { %v53_v20 = vpop.xlane.xlu0 %52 }
 0x149   :  { %v54_v21 = vrot.slane %v53_v20, 4 }
 0x14b   :  { %v55_v22 = vadd.f32 %v54_v21, %v53_v20 }
 0x14d   :  { %v56_v23 = vrot.slane %v55_v22, 2 }
 0x14f   :  { %v57_v24 = vadd.f32 %v56_v23, %v55_v22 }
 0x151   :  { %v58_v25 = vrot.slane %v57_v24, 1 }
 0x153   :  { %v59_v26 = vadd.f32 %v58_v25, %v57_v24 }
 0x155   :  { %80 = vpush %v59_v26 }
 0x186   :  { %s81_s19 = spop %80 }
 0x187   :  { %s63_s20 = smul.f32 0.125, %s81_s19 }
 0x189   :  { %65 = sst [smem:[#allocation5]] %s63_s20 }
 0x18a   :  { %73 = dma.smem_to_hbm %s119_s21, 16, %s155_s3, [#allocation4]  }
 0x18b   :  { %116 = dma.done.wait [#allocation4], 16  }
 0x18c   :  { %117 = vsyncadd [#allocation4], 4294967280 }
 0x18d   :  { %77 = sfence }
 0x18e   :  { %78 = vsyncpa [#allocation3], 1 }
 0x18f   :  { %79 = vsyncpa [#allocation4], 1 }

</bundles_post_ra>
